<compile_context>
chip_gen: v7x
topology: tpu7x:2x2x1
jax: 0.10.0
libtpu: 0.0.40
codegen_flags: <defaults>
</compile_context>

<pallas_src>
import jax
import jax.numpy as jnp
from jax.experimental import pallas as pl
from jax.experimental.pallas import tpu as pltpu


def _round_up(a: int, b: int) -> int:
    return (a + b - 1) // b * b


def _patch_embed_kernel(x_ref, w_ref, b_ref, o_ref):
    # x_ref: (tn, P)     one channel's row tile of patches
    # w_ref: (P, E_pad)  that channel's weight slab
    # b_ref: (1, E_pad)  bias
    # o_ref: (tn, E_pad) f32 output block, resident across the C grid axis
    c = pl.program_id(2)

    @pl.when(c == 0)
    def _init():
        o_ref[...] = jnp.broadcast_to(b_ref[...], o_ref.shape)

    o_ref[...] += jnp.dot(
        x_ref[...], w_ref[...], preferred_element_type=jnp.float32
    )


def patch_embed(x, weight, bias, patch_length, *, row_tile=512):
    """Equivalent of PatchEmbed.forward: proj(x).flatten(2).transpose(1, 2).

    x: (B, C, H, W) float32 (NCHW, as in PyTorch).
    weight: (E, C, 1, P) Conv2d weight. bias: (E,).
    Returns (B, H*(W//P), E).
    """
    B, C, H, W = x.shape
    E = weight.shape[0]
    P = patch_length
    assert W % P == 0, "W must be divisible by patch_length"
    Wp = W // P
    N = H * Wp          # tokens per batch element
    K = C * P           # logical contraction size (cost estimate only)

    # Free reshape in NCHW: (B, C, H, W) -> (B, C, N, P). No HBM copy.
    x4 = x.reshape(B, C, N, P)

    # Per-channel weight slabs (C, P, E); pad E to a lane-dense multiple of 128.
    E_pad = _round_up(E, 128)
    w_p = jnp.transpose(weight.reshape(E, C, P), (1, 2, 0))      # (C, P, E)
    b_p = bias.reshape(1, E)
    if E_pad != E:
        w_p = jnp.pad(w_p, ((0, 0), (0, 0), (0, E_pad - E)))
        b_p = jnp.pad(b_p, ((0, 0), (0, E_pad - E)))

    # Row tile: big (row_tile) when N is large, otherwise a single 8-aligned tile.
    tn = row_tile if N >= row_tile else _round_up(N, 8)
    n_tiles = pl.cdiv(N, tn)

    out = pl.pallas_call(
        _patch_embed_kernel,
        out_shape=jax.ShapeDtypeStruct((B, N, E_pad), jnp.float32),
        grid_spec=pltpu.PrefetchScalarGridSpec(
            num_scalar_prefetch=0,
            grid=(B, n_tiles, C),
            in_specs=[
                # x: one channel's (tn, P) tile of patch rows.
                pl.BlockSpec((None, None, tn, P), lambda b, i, c: (b, c, i, 0)),
                # weight: channel c's (P, E_pad) slab.
                pl.BlockSpec((None, P, E_pad), lambda b, i, c: (c, 0, 0)),
                # bias (broadcast inside the kernel at c == 0).
                pl.BlockSpec((1, E_pad), lambda b, i, c: (0, 0)),
            ],
            # Output block index constant across c -> VMEM-resident accumulator.
            out_specs=pl.BlockSpec((None, tn, E_pad), lambda b, i, c: (b, i, 0)),
        ),
        compiler_params=pltpu.CompilerParams(
            dimension_semantics=("parallel", "parallel", "arbitrary"),
            vmem_limit_bytes=32 * 1024 * 1024,
        ),
        cost_estimate=pl.CostEstimate(
            flops=2 * B * N * K * E,
            transcendentals=0,
            bytes_accessed=(B * N * K + K * E + B * N * E) * 4,
        ),
    )(x4, w_p, b_p)

    if E_pad != E:
        out = out[:, :, :E]
    return out


if __name__ == "__main__":
    # Small shapes consistent with the module's forward.
    B, C, H, W = 2, 4, 16, 16
    patch_length = 4
    E = 32

    key = jax.random.PRNGKey(0)
    kx, kw, kb = jax.random.split(key, 3)

    x = jax.random.normal(kx, (B, C, H, W), dtype=jnp.float32)
    # Conv2d weight shape: (out_channels, in_channels, 1, patch_length)
    weight = jax.random.normal(kw, (E, C, 1, patch_length), dtype=jnp.float32) * 0.02
    bias = jax.random.normal(kb, (E,), dtype=jnp.float32) * 0.02

    patch_embed_fn = jax.jit(patch_embed, static_argnames=("patch_length", "row_tile"))
    out = patch_embed_fn(x, weight, bias, patch_length=patch_length)
    out = jax.block_until_ready(out)

    # Pure-JAX reference (same math as PyTorch Conv2d + flatten + transpose).
    Wp = W // patch_length
    x_ref = jnp.transpose(
        x.reshape(B, C, H, Wp, patch_length), (0, 2, 3, 1, 4)
    ).reshape(B, H * Wp, C * patch_length)
    ref = x_ref @ weight.reshape(E, C * patch_length).T + bias

    assert out.shape == (B, H * Wp, E)
    assert jnp.allclose(out, ref, atol=1e-4, rtol=1e-4)
    print("KERNEL_OK")
</pallas_src>

<mosaic_0001>
module attributes {stable_mosaic.version = 11 : i64} {
  func.func @_patch_embed_kernel(%arg0: i32, %arg1: i32, %arg2: i32, %arg3: memref<1x1x64x4xf32, #tpu.memory_space<vmem>>, %arg4: memref<1x4x128xf32, #tpu.memory_space<vmem>>, %arg5: memref<1x128xf32, #tpu.memory_space<vmem>>, %arg6: memref<1x64x128xf32, #tpu.memory_space<vmem>>) attributes {dimension_semantics = [#tpu.dimension_semantics<parallel>, #tpu.dimension_semantics<parallel>, #tpu.dimension_semantics<arbitrary>], iteration_bounds = array<i64: 2, 1, 4>, scalar_prefetch = 0 : i64, scratch_operands = 0 : i64, tpu.core_type = #tpu.core_type<tc>, window_params = [{transform_indices = @transform_0, window_bounds = array<i64: 1, 1, 64, 4>}, {transform_indices = @transform_1, window_bounds = array<i64: 1, 4, 128>}, {pipeline_mode = #tpu.pipeline_mode<synchronous>, transform_indices = @transform_2, window_bounds = array<i64: 1, 128>}, {transform_indices = @transform_3, window_bounds = array<i64: 1, 64, 128>}]} {
    %c0_i32 = arith.constant 0 : i32
    %0 = arith.cmpi eq, %arg2, %c0_i32 : i32
    %1 = arith.extui %0 : i1 to i32
    %c0_i32_0 = arith.constant 0 : i32
    %2 = arith.cmpi ne, %1, %c0_i32_0 : i32
    scf.if %2 {
      %c0_13 = arith.constant 0 : index
      %c0_14 = arith.constant 0 : index
      %14 = vector.load %arg5[%c0_13, %c0_14] : memref<1x128xf32, #tpu.memory_space<vmem>>, vector<1x128xf32>
      %15 = vector.shape_cast %14 : vector<1x128xf32> to vector<1x128xf32>
      %16 = vector.broadcast %15 : vector<1x128xf32> to vector<64x128xf32>
      %c0_15 = arith.constant 0 : index
      %c0_16 = arith.constant 0 : index
      %c0_17 = arith.constant 0 : index
      %17 = vector.load %arg6[%c0_15, %c0_16, %c0_17] : memref<1x64x128xf32, #tpu.memory_space<vmem>>, vector<1x64x128xf32>
      %18 = vector.shape_cast %17 : vector<1x64x128xf32> to vector<64x128xf32>
      %19 = vector.shape_cast %16 : vector<64x128xf32> to vector<1x64x128xf32>
      tpu.vector_store %arg6[%c0_15, %c0_16, %c0_17], %19 {strides = array<i32>} : memref<1x64x128xf32, #tpu.memory_space<vmem>>, vector<1x64x128xf32>,
    } else {
    }
    %c0 = arith.constant 0 : index
    %c0_1 = arith.constant 0 : index
    %c0_2 = arith.constant 0 : index
    %3 = vector.load %arg6[%c0, %c0_1, %c0_2] : memref<1x64x128xf32, #tpu.memory_space<vmem>>, vector<1x64x128xf32>
    %4 = vector.shape_cast %3 : vector<1x64x128xf32> to vector<64x128xf32>
    %c0_3 = arith.constant 0 : index
    %c0_4 = arith.constant 0 : index
    %c0_5 = arith.constant 0 : index
    %c0_6 = arith.constant 0 : index
    %5 = vector.load %arg3[%c0_3, %c0_4, %c0_5, %c0_6] : memref<1x1x64x4xf32, #tpu.memory_space<vmem>>, vector<1x1x64x4xf32>
    %6 = vector.shape_cast %5 : vector<1x1x64x4xf32> to vector<64x4xf32>
    %c0_7 = arith.constant 0 : index
    %c0_8 = arith.constant 0 : index
    %c0_9 = arith.constant 0 : index
    %7 = vector.load %arg4[%c0_7, %c0_8, %c0_9] : memref<1x4x128xf32, #tpu.memory_space<vmem>>, vector<1x4x128xf32>
    %8 = vector.shape_cast %7 : vector<1x4x128xf32> to vector<4x128xf32>
    %cst = arith.constant dense<0.000000e+00> : vector<64x128xf32>
    %9 = tpu.matmul %6, %8, %cst {dimension_numbers = #tpu.dot_dimension_numbers<[1], [0], [0], [1], [0, 0, 1, 1], [], []>} : vector<64x4xf32>, vector<4x128xf32>, vector<64x128xf32> -> vector<64x128xf32>
    %10 = arith.addf %4, %9 : vector<64x128xf32>
    %c0_10 = arith.constant 0 : index
    %c0_11 = arith.constant 0 : index
    %c0_12 = arith.constant 0 : index
    %11 = vector.load %arg6[%c0_10, %c0_11, %c0_12] : memref<1x64x128xf32, #tpu.memory_space<vmem>>, vector<1x64x128xf32>
    %12 = vector.shape_cast %11 : vector<1x64x128xf32> to vector<64x128xf32>
    %13 = vector.shape_cast %10 : vector<64x128xf32> to vector<1x64x128xf32>
    tpu.vector_store %arg6[%c0_10, %c0_11, %c0_12], %13 {strides = array<i32>} : memref<1x64x128xf32, #tpu.memory_space<vmem>>, vector<1x64x128xf32>,
    return
  }
  func.func @transform_0(%arg0: i32, %arg1: i32, %arg2: i32) -> (i32, i32, i32, i32) {
    %c0_i32 = arith.constant 0 : i32
    %c0_i32_0 = arith.constant 0 : i32
    return %arg0, %arg2, %arg1, %c0_i32 : i32, i32, i32, i32
  }
  func.func @transform_1(%arg0: i32, %arg1: i32, %arg2: i32) -> (i32, i32, i32) {
    %c0_i32 = arith.constant 0 : i32
    %c0_i32_0 = arith.constant 0 : i32
    %c0_i32_1 = arith.constant 0 : i32
    return %arg2, %c0_i32, %c0_i32_0 : i32, i32, i32
  }
  func.func @transform_2(%arg0: i32, %arg1: i32, %arg2: i32) -> (i32, i32) {
    %c0_i32 = arith.constant 0 : i32
    %c0_i32_0 = arith.constant 0 : i32
    %c0_i32_1 = arith.constant 0 : i32
    return %c0_i32, %c0_i32_0 : i32, i32
  }
  func.func @transform_3(%arg0: i32, %arg1: i32, %arg2: i32) -> (i32, i32, i32) {
    %c0_i32 = arith.constant 0 : i32
    %c0_i32_0 = arith.constant 0 : i32
    return %arg0, %arg1, %c0_i32 : i32, i32, i32
  }
}

</mosaic_0001>

<bundles_post_ra>
// kernel: patch_embed.1
= control target key start
LH: loop header
LB: loop body
LE: loop exit
PB: predicated region body
PF: predicated region fallthrough
CT: control target
= control target key end

     0   :  { %s695_s12 = smov 0   ;;  %s697_s13 = smov 0   ;;  %s801_s0 = inlined_call_operand.vmem [shape: f32[2,4,64,4], index: 0, kind: input, shape index: {}]   ;;  %s802_s1 = inlined_call_operand.vmem [shape: f32[4,4,128], index: 1, kind: input, shape index: {}]   ;;  %s803_s2 = inlined_call_operand.vmem [shape: f32[1,128], index: 2, kind: input, shape index: {}]   ;;  %s804_s3 = inlined_call_operand.vmem [shape: f32[2,64,128], index: 3, kind: output, shape index: {}]  }
   0x1   :  { %s699_s14 = smov 0   ;;  %s701_s15 = smov 0  }
   0x2   :  { %s703_s16 = smov 0  }
   0x3 LB: > { %s25_s17 = sadd.s32 1, %s665_s14  ;;  %s32_s18 = sadd.s32 1, %s669_s15  ;;  %s673_s16 = sphi %s703_s16, %s13_s16   ;;  %s669_s15 = sphi %s701_s15, %s808_s15   ;;  %s665_s14 = sphi %s699_s14, %s807_s14   ;;  %s661_s13 = sphi %s697_s13, %s806_s13   ;;  %s657_s12 = sphi %s695_s12, %s805_s12  }
   0x4   : > { %p26_p0 = scmp.ge.s32.totalorder %s25_s17, 4  ;;  %p549_p1 = scmp.ge.s32.totalorder %s673_s16, 1 }
   0x5   : > { %p180_p2 = scmp.lt.s32.totalorder %s673_s16, 9 }
   0x6   : > { %s810_s17 = smov (%p26_p0, %s25_s17), 0  ;;  %s812_s18 = smov (!%p26_p0, %s32_s18), %s669_s15 }
   0x7   : > { %p181_p3 = pnand %p549_p1, %p180_p2  ;;  %p34_p4 = scmp.ge.s32.totalorder %s812_s18, 2 }
   0x8   : > { %p221_p5 = scmp.lt.s32.totalorder (!%p181_p3), %s661_s13, 1  ;;  %p223_p6 = scmp.lt.s32.totalorder (!%p181_p3), %s657_s12, 3 }
   0x9   : > { %s814_s18 = smov (%p34_p4, %s812_s18), 0  ;;  %184 = sbr.rel (%p181_p3) target bundleno = 250 (0xfa), region = 32 }
   0xa   : > { %p556_p7 = scmp.ne.s32.totalorder (!%p181_p3), %s657_s12, 0 }
  0x10   : > { %s816_s13 = smov (!%p221_p5, %s661_s13), 1  ;;  %251 = sbr.rel (%p556_p7) target bundleno = 26 (0x1a), region = 36 }
  0x11   : > { %s224_s19 = scalar_select %p223_p6, %s657_s12, 3 }
  0x12   : > { %s551_s20 = sshll.u32 %s816_s13, 5  ;;  %s569_s21 = sshll.u32 %s816_s13, 6  ;;  %v557_v0 = vld [vmem:[%s803_s2] ss:$0 sm:$0xff] (!%p556_p7) }
  0x13   : > { %s550_s22 = sshll.u32 %s224_s19, 3  ;;  %s553_s23 = sshll.u32 %s224_s19, 2 }
  0x14   : > { %s230_s24 = sadd.s32 %s551_s20, %s550_s22  ;;  %s237_s27 = scalar_lea.vmem %s802_s1, %s553_s23 }
  0x15   : > { %s552_s28 = sshll.u32 %s230_s24, 3  ;;  %s735_s4 = scalar_lea.vmem %s804_s3, %s569_s21 }
  0x16   : > { %s740_s7 = scalar_lea.vmem %s801_s0, %s552_s28  ;;  %259 = vst [vmem:[%s735_s4] sm:$0xff] (!%p556_p7), %v557_v0  ;;  %260 = vst [vmem:[%s735_s4 + $0x8] sm:$0xff] (!%p556_p7), %v557_v0 }
  0x17   : > { %261 = vst [vmem:[%s735_s4 + $0x10] sm:$0xff] %v557_v0  ;;  %262 = vst [vmem:[%s735_s4 + $0x18] sm:$0xff] %v557_v0 }
  0x18   : > { %263 = vst [vmem:[%s735_s4 + $0x20] sm:$0xff] %v557_v0  ;;  %264 = vst [vmem:[%s735_s4 + $0x28] sm:$0xff] %v557_v0 }
  0x19   : > { %265 = vst [vmem:[%s735_s4 + $0x30] sm:$0xff] %v557_v0  ;;  %266 = vst [vmem:[%s735_s4 + $0x38] sm:$0xff] %v557_v0 }
  0x1a PF: > { %v283_v1 = vld [vmem:[%s237_s27] sm:$0xf]  ;;  %vm309_vm0 = vcmask 1043456   ;;  %vm284_vm1 = vcmask 31744   ;;  %v276_v4 = vld [vmem:[%s740_s7 + $0x8] sm:$0xff]  ;;  %v277_v6 = vld [vmem:[%s740_s7 + $0x10] sm:$0xff] }
  0x1b   : > { %v275_v2 = vld [vmem:[%s740_s7] sm:$0xff]  ;;  %579 = vmatprep.subr.msk.mxu0 %vm309_vm0, %v283_v1  ;;  %593 = vmatprep.subr.msk.mxu1 %vm309_vm0, %v283_v1  ;;  %v280_v5 = vld [vmem:[%s740_s7 + $0x28] sm:$0xff]  ;;  %v281_v7 = vld [vmem:[%s740_s7 + $0x30] sm:$0xff] }
  0x1c   : > { %v279_v3 = vld [vmem:[%s740_s7 + $0x20] sm:$0xff]  ;;  %580 = vmatpush3.msk.msra.mxu0 %vm309_vm0, %v283_v1  ;;  %594 = vmatpush3.msk.msra.mxu1 %vm309_vm0, %v283_v1  ;;  %v278_v8 = vld [vmem:[%s740_s7 + $0x18] sm:$0xff] }
  0x1d   : > { %581 = vmatprep.mubr.msk.f32.mxu0 %vm284_vm1, %v275_v2  ;;  %587 = vmatprep.mubr.msk.f32.mxu1 %vm284_vm1, %v279_v3  ;;  %v282_v9 = vld [vmem:[%s740_s7 + $0x38] sm:$0xff] }
  0x1e   : > { %582 = vmatmul.mubr.msk.f32.vlgmr.msra.gmra.mrb[0].mxu0 %vm284_vm1, %v276_v4  ;;  %588 = vmatmul.mubr.msk.f32.vlgmr.msra.gmra.mrb[0].mxu1 %vm284_vm1, %v280_v5 }
  0x1f   : > { %584 = vmatprep.mubr.msk.f32.mxu0 %vm284_vm1, %v277_v6  ;;  %590 = vmatprep.mubr.msk.f32.mxu1 %vm284_vm1, %v281_v7  ;;  %v272_v11 = vld [vmem:[%s735_s4 + $0x28] sm:$0xff]  ;;  %v271_v13 = vld [vmem:[%s735_s4 + $0x20] sm:$0xff] }
  0x20   : > { %v268_v10 = vld [vmem:[%s735_s4 + $0x8] sm:$0xff]  ;;  %v267_v12 = vld [vmem:[%s735_s4] sm:$0xff]  ;;  %v274_v23 = vld [vmem:[%s735_s4 + $0x38] sm:$0xff] }
  0x21   : > { %v270_v22 = vld [vmem:[%s735_s4 + $0x18] sm:$0xff]  ;;  %v269_v24 = vld [vmem:[%s735_s4 + $0x10] sm:$0xff] }
  0x22   : > { %585 = vmatmul.mubr.msk.f32.gmra.mrb[2].mxu0 %vm284_vm1, %v278_v8  ;;  %591 = vmatmul.mubr.msk.f32.gmra.mrb[2].mxu1 %vm284_vm1, %v282_v9  ;;  %v273_v25 = vld [vmem:[%s735_s4 + $0x30] sm:$0xff] }
  0xf1   : > { %v583_v14 = vpop.f32.mrb[0].mxu0  ;;  %v589_v15 = vpop.f32.mrb[0].mxu1 }
  0xf2   : > { %v419_v16 = vadd.f32 %v583_v14, %v268_v10  ;;  %v423_v17 = vadd.f32 %v589_v15, %v272_v11  ;;  %v379_v18 = vpop.f32.mrb[1].mxu0  ;;  %v399_v19 = vpop.f32.mrb[1].mxu1 }
  0xf3   : > { %v418_v20 = vadd.f32 %v379_v18, %v267_v12  ;;  %v422_v21 = vadd.f32 %v399_v19, %v271_v13 }
  0xf4   : > { %427 = vst [vmem:[%s735_s4 + $0x8] sm:$0xff] %v419_v16  ;;  %431 = vst [vmem:[%s735_s4 + $0x28] sm:$0xff] %v423_v17 }
  0xf5   : > { %426 = vst [vmem:[%s735_s4] sm:$0xff] %v418_v20  ;;  %430 = vst [vmem:[%s735_s4 + $0x20] sm:$0xff] %v422_v21  ;;  %v586_v26 = vpop.f32.mrb[2].mxu0  ;;  %v592_v27 = vpop.f32.mrb[2].mxu1 }
  0xf6   : > { %v421_v28 = vadd.f32 %v586_v26, %v270_v22  ;;  %v425_v29 = vadd.f32 %v592_v27, %v274_v23  ;;  %v389_v30 = vpop.f32.mrb[3].mxu0  ;;  %v409_v31 = vpop.f32.mrb[3].mxu1 }
  0xf7   : > { %v420_v32 = vadd.f32 %v389_v30, %v269_v24  ;;  %v424_v33 = vadd.f32 %v409_v31, %v273_v25 }
  0xf8   : > { %429 = vst [vmem:[%s735_s4 + $0x18] sm:$0xff] %v421_v28  ;;  %433 = vst [vmem:[%s735_s4 + $0x38] sm:$0xff] %v425_v29 }
  0xf9   : > { %428 = vst [vmem:[%s735_s4 + $0x10] sm:$0xff] %v420_v32  ;;  %432 = vst [vmem:[%s735_s4 + $0x30] sm:$0xff] %v424_v33 }
  0xfa PF: > { %s13_s16 = sadd.s32 1, %s673_s16   ;;  %s805_s12 = smov %s665_s14 }
  0xfb   : > { %p10_p8 = scmp.ge.s32.totalorder %s13_s16, 10   ;;  %s806_s13 = smov %s669_s15 }
  0xfc   : > { %s807_s14 = smov %s810_s17  ;;  %s808_s15 = smov %s814_s18 }
  0xfd   :  { %12 = sbr.rel (!%p10_p8) target bundleno = 3 (0x3), region = 69 }

</bundles_post_ra>
